<compile_context>
chip_gen: v6e
topology: v6e:2x2x1
jax: 0.10.0
libtpu: 0.0.40
codegen_flags: <defaults>
</compile_context>

<pallas_src>
import math
import functools

import jax
import jax.numpy as jnp
from jax.experimental import pallas as pl
from jax.experimental.pallas import tpu as pltpu


_VMEM_BUDGET = 40 * 1024 * 1024   # target working-set (double-buffered) per call
_VMEM_LIMIT = 48 * 1024 * 1024    # scoped VMEM limit (< 64 MiB physical on v7x)


# ---------------------------------------------------------------------------
# Fused Q/K/V projection kernel (row-tiled GEMM, weights resident)
# ---------------------------------------------------------------------------

def _qkv_proj_kernel(x_ref, wq_ref, bq_ref, wk_ref, bk_ref, wv_ref, bv_ref,
                     yq_ref, yk_ref, yv_ref):
    x = x_ref[...]
    yq_ref[...] = (jnp.dot(x, wq_ref[...], preferred_element_type=jnp.float32)
                   + bq_ref[...]).astype(yq_ref.dtype)
    yk_ref[...] = (jnp.dot(x, wk_ref[...], preferred_element_type=jnp.float32)
                   + bk_ref[...]).astype(yk_ref.dtype)
    yv_ref[...] = (jnp.dot(x, wv_ref[...], preferred_element_type=jnp.float32)
                   + bv_ref[...]).astype(yv_ref.dtype)


def qkv_projection(x2d, wq, bq, wk, bk, wv, bv, *, tile_rows=256):
    """x2d: (N, d_in) -> (N, h*q), (N, h*q), (N, h*v). One pass over x."""
    N, d_in = x2d.shape
    hq = wq.shape[1]
    hv = wv.shape[1]

    tm = N if N <= tile_rows else tile_rows

    def est(t):   # bytes, double-buffered fp32
        return 8 * (t * d_in + d_in * (2 * hq + hv) + t * (2 * hq + hv) + (2 * hq + hv))

    while est(tm) > _VMEM_BUDGET and tm > 8:
        tm = max(8, (tm // 2) // 8 * 8)

    return pl.pallas_call(
        _qkv_proj_kernel,
        out_shape=(jax.ShapeDtypeStruct((N, hq), x2d.dtype),
                   jax.ShapeDtypeStruct((N, hq), x2d.dtype),
                   jax.ShapeDtypeStruct((N, hv), x2d.dtype)),
        grid=(pl.cdiv(N, tm),),
        in_specs=[
            pl.BlockSpec((tm, d_in), lambda i: (i, 0)),
            pl.BlockSpec((d_in, hq), lambda i: (0, 0)),
            pl.BlockSpec((1, hq), lambda i: (0, 0)),
            pl.BlockSpec((d_in, hq), lambda i: (0, 0)),
            pl.BlockSpec((1, hq), lambda i: (0, 0)),
            pl.BlockSpec((d_in, hv), lambda i: (0, 0)),
            pl.BlockSpec((1, hv), lambda i: (0, 0)),
        ],
        out_specs=(
            pl.BlockSpec((tm, hq), lambda i: (i, 0)),
            pl.BlockSpec((tm, hq), lambda i: (i, 0)),
            pl.BlockSpec((tm, hv), lambda i: (i, 0)),
        ),
        compiler_params=pltpu.CompilerParams(
            dimension_semantics=("parallel",),
            vmem_limit_bytes=_VMEM_LIMIT),
    )(x2d, wq, bq, wk, bk, wv, bv)


# ---------------------------------------------------------------------------
# Output projection (row-tiled linear)
# ---------------------------------------------------------------------------

def _linear_kernel(x_ref, w_ref, b_ref, o_ref):
    o_ref[...] = (jnp.dot(x_ref[...], w_ref[...], preferred_element_type=jnp.float32)
                  + b_ref[...]).astype(o_ref.dtype)


def linear_pallas(x2d, w, b, *, tile_rows=256):
    """x2d: (N, d_in), w: (d_in, d_out), b: (1, d_out) -> (N, d_out)."""
    N, d_in = x2d.shape
    d_out = w.shape[1]

    tm = N if N <= tile_rows else tile_rows
    while 8 * (tm * d_in + d_in * d_out + tm * d_out + d_out) > _VMEM_BUDGET and tm > 8:
        tm = max(8, (tm // 2) // 8 * 8)

    return pl.pallas_call(
        _linear_kernel,
        out_shape=jax.ShapeDtypeStruct((N, d_out), x2d.dtype),
        grid=(pl.cdiv(N, tm),),
        in_specs=[
            pl.BlockSpec((tm, d_in), lambda i: (i, 0)),
            pl.BlockSpec((d_in, d_out), lambda i: (0, 0)),
            pl.BlockSpec((1, d_out), lambda i: (0, 0)),
        ],
        out_specs=pl.BlockSpec((tm, d_out), lambda i: (i, 0)),
        compiler_params=pltpu.CompilerParams(
            dimension_semantics=("parallel",),
            vmem_limit_bytes=_VMEM_LIMIT),
    )(x2d, w, b)


# ---------------------------------------------------------------------------
# Attention kernel: all heads per (batch, query-tile) grid step
# ---------------------------------------------------------------------------

def _attention_kernel(q_ref, k_ref, v_ref, raw_ref, attn_ref, *,
                      h, q_dim, v_dim, scale, causal, seq_len, tq):
    # q_ref: (1, tq, h*q)   k_ref: (1, S, h*q)   v_ref: (1, S, h*v)
    # raw_ref: (h, 1, tq, S)   attn_ref: (1, tq, h*v)
    q_all = q_ref[0]
    k_all = k_ref[0]
    v_all = v_ref[0]

    if causal:
        qi = pl.program_id(1)
        row = qi * tq + jax.lax.broadcasted_iota(jnp.int32, (tq, seq_len), 0)
        col = jax.lax.broadcasted_iota(jnp.int32, (tq, seq_len), 1)
        keep = col <= row
        neg = jnp.float32(-2.0 ** 32 + 1.0)

    for hh in range(h):
        # Static lane slices: head split done in-kernel, no XLA transpose.
        qh = q_all[:, hh * q_dim:(hh + 1) * q_dim] * scale   # fold 1/sqrt(q) into Q
        kh = k_all[:, hh * q_dim:(hh + 1) * q_dim]
        vh = v_all[:, hh * v_dim:(hh + 1) * v_dim]

        # Contract last dims directly (no explicit K transpose).
        s = jax.lax.dot_general(qh, kh, (((1,), (1,)), ((), ())),
                                preferred_element_type=jnp.float32)   # (tq, S)

        # Raw (pre-mask, pre-softmax) score, as in self.score.
        raw_ref[hh, 0] = s.astype(raw_ref.dtype)

        if causal:
            s = jnp.where(keep, s, neg)

        m = jnp.max(s, axis=-1, keepdims=True)
        e = jnp.exp(s - m)
        p = e * pl.reciprocal(jnp.sum(e, axis=-1, keepdims=True), approx=True)

        a = jnp.dot(p, vh, preferred_element_type=jnp.float32)       # (tq, v)
        # Write directly into the merged (B, S, h*v) layout.
        attn_ref[0, :, hh * v_dim:(hh + 1) * v_dim] = a.astype(attn_ref.dtype)


def attention_pallas(Qp, Kp, Vp, *, h, q_dim, v_dim, causal):
    """Qp/Kp: (B, S, h*q), Vp: (B, S, h*v).

    Returns raw score (h*B, S, S) fp32 (head-major, matches torch.cat(chunk,0))
    and merged attention output (B, S, h*v)."""
    B, S, HQ = Qp.shape
    HV = Vp.shape[-1]

    # Query tile: keep the fp32 (h, tq, S) score block + full-S K/V within budget.
    tq = S if S <= 128 else 128

    def est(t):   # bytes, double-buffered fp32
        return 8 * (t * HQ + S * HQ + S * HV + h * t * S + t * HV)

    while est(tq) > _VMEM_BUDGET and tq > 8:
        tq = max(8, (tq // 2) // 8 * 8)

    kern = functools.partial(_attention_kernel, h=h, q_dim=q_dim, v_dim=v_dim,
                             scale=1.0 / math.sqrt(q_dim), causal=causal,
                             seq_len=S, tq=tq)

    raw4, attn = pl.pallas_call(
        kern,
        out_shape=(
            jax.ShapeDtypeStruct((h, B, S, S), jnp.float32),
            jax.ShapeDtypeStruct((B, S, HV), Qp.dtype),
        ),
        grid=(B, pl.cdiv(S, tq)),
        in_specs=[
            pl.BlockSpec((1, tq, HQ), lambda b, qi: (b, qi, 0)),
            pl.BlockSpec((1, S, HQ), lambda b, qi: (b, 0, 0)),   # K resident over q-tiles
            pl.BlockSpec((1, S, HV), lambda b, qi: (b, 0, 0)),   # V resident over q-tiles
        ],
        out_specs=(
            pl.BlockSpec((h, 1, tq, S), lambda b, qi: (0, b, qi, 0)),
            pl.BlockSpec((1, tq, HV), lambda b, qi: (b, qi, 0)),
        ),
        compiler_params=pltpu.CompilerParams(
            dimension_semantics=("parallel", "parallel"),
            vmem_limit_bytes=_VMEM_LIMIT),
    )(Qp, Kp, Vp)

    # (h, B, S, S) -> (h*B, S, S) is a contiguous (free) reshape; head-major order
    # matches torch.cat(chunk(., h, -1), 0).
    return raw4.reshape(h * B, S, S), attn


# ---------------------------------------------------------------------------
# Module wrapper (params + glue; only metadata reshapes on the JAX side)
# ---------------------------------------------------------------------------

def init_mha_params(key, d_model, q, v, h):
    """Mimic torch.nn.Linear default init (U[-1/sqrt(in), 1/sqrt(in)]).
    Weights stored transposed: (d_in, d_out)."""
    def lin(k, d_in, d_out):
        k1, k2 = jax.random.split(k)
        bound = 1.0 / math.sqrt(d_in)
        w = jax.random.uniform(k1, (d_in, d_out), jnp.float32, -bound, bound)
        b = jax.random.uniform(k2, (1, d_out), jnp.float32, -bound, bound)
        return w, b

    kq, kk, kv, ko = jax.random.split(key, 4)
    return {
        "W_q": lin(kq, d_model, q * h),
        "W_k": lin(kk, d_model, q * h),
        "W_v": lin(kv, d_model, v * h),
        "W_o": lin(ko, v * h, d_model),
    }


def multi_head_attention(params, x, *, q, v, h, mask=False, stage="test"):
    """x: (B, S, d_model) -> (self_attention (B,S,d_model), score (h*B,S,S))."""
    B, S, d_model = x.shape
    x2d = x.reshape(B * S, d_model)

    (wq, bq) = params["W_q"]
    (wk, bk) = params["W_k"]
    (wv, bv) = params["W_v"]

    yq, yk, yv = qkv_projection(x2d, wq, bq, wk, bk, wv, bv)
    Qp = yq.reshape(B, S, h * q)   # free reshapes; head split happens in-kernel
    Kp = yk.reshape(B, S, h * q)
    Vp = yv.reshape(B, S, h * v)

    causal = bool(mask) and (stage == "train")
    raw_score, attn = attention_pallas(Qp, Kp, Vp, h=h, q_dim=q, v_dim=v,
                                       causal=causal)

    w_o, b_o = params["W_o"]
    out = linear_pallas(attn.reshape(B * S, h * v), w_o, b_o).reshape(B, S, d_model)
    return out, raw_score


# ---------------------------------------------------------------------------
# Pure-JAX reference for the sanity check
# ---------------------------------------------------------------------------

def reference(params, x, *, q, v, h, causal=False):
    B, S, d_model = x.shape

    def lin(name, t):
        w, b = params[name]
        return t @ w + b[0]

    Qp, Kp, Vp = lin("W_q", x), lin("W_k", x), lin("W_v", x)

    def split(t, dh):
        return t.reshape(B, S, h, dh).transpose(2, 0, 1, 3).reshape(h * B, S, dh)

    Q, K, V = split(Qp, q), split(Kp, q), split(Vp, v)
    raw = jnp.einsum("bik,bjk->bij", Q, K) / math.sqrt(q)
    s = raw
    if causal:
        row = jnp.arange(S)[:, None]
        col = jnp.arange(S)[None, :]
        s = jnp.where(col <= row, s, jnp.float32(-2.0 ** 32 + 1.0))
    p = jax.nn.softmax(s, axis=-1)
    attn = jnp.einsum("bij,bjd->bid", p, V)
    heads = attn.reshape(h, B, S, v).transpose(1, 2, 0, 3).reshape(B, S, h * v)
    out = lin("W_o", heads)
    return out, raw


# ---------------------------------------------------------------------------

if __name__ == "__main__":
    B, S, d_model = 2, 8, 32
    q_dim, v_dim, h = 8, 8, 4

    key = jax.random.PRNGKey(0)
    kx, kp = jax.random.split(key)
    x = jax.random.normal(kx, (B, S, d_model), jnp.float32)
    params = init_mha_params(kp, d_model, q_dim, v_dim, h)

    # --- non-masked path ---
    out, score = multi_head_attention(params, x, q=q_dim, v=v_dim, h=h,
                                      mask=False, stage="test")
    out = jax.block_until_ready(out)
    score = jax.block_until_ready(score)

    ref_out, ref_score = reference(params, x, q=q_dim, v=v_dim, h=h, causal=False)
    assert out.shape == (B, S, d_model)
    assert score.shape == (h * B, S, S)
    assert jnp.allclose(score, ref_score, atol=1e-4, rtol=1e-4)
    # out uses the EUP approximate reciprocal in the softmax -> slightly looser tol
    assert jnp.allclose(out, ref_out, atol=2e-3, rtol=2e-3)

    # --- causal (mask & train) path ---
    out_m, score_m = multi_head_attention(params, x, q=q_dim, v=v_dim, h=h,
                                          mask=True, stage="train")
    out_m = jax.block_until_ready(out_m)
    score_m = jax.block_until_ready(score_m)

    ref_out_m, ref_score_m = reference(params, x, q=q_dim, v=v_dim, h=h, causal=True)
    assert jnp.allclose(score_m, ref_score_m, atol=1e-4, rtol=1e-4)  # .score is pre-mask
    assert jnp.allclose(out_m, ref_out_m, atol=2e-3, rtol=2e-3)

    print("KERNEL_OK")
</pallas_src>

<mosaic_0001>
module attributes {stable_mosaic.version = 11 : i64} {
  func.func @_qkv_proj_kernel(%arg0: i32, %arg1: memref<16x32xf32, #tpu.memory_space<vmem>>, %arg2: memref<32x32xf32, #tpu.memory_space<vmem>>, %arg3: memref<1x32xf32, #tpu.memory_space<vmem>>, %arg4: memref<32x32xf32, #tpu.memory_space<vmem>>, %arg5: memref<1x32xf32, #tpu.memory_space<vmem>>, %arg6: memref<32x32xf32, #tpu.memory_space<vmem>>, %arg7: memref<1x32xf32, #tpu.memory_space<vmem>>, %arg8: memref<16x32xf32, #tpu.memory_space<vmem>>, %arg9: memref<16x32xf32, #tpu.memory_space<vmem>>, %arg10: memref<16x32xf32, #tpu.memory_space<vmem>>) attributes {dimension_semantics = [#tpu.dimension_semantics<parallel>], iteration_bounds = array<i64: 1>, scalar_prefetch = 0 : i64, scratch_operands = 0 : i64, tpu.core_type = #tpu.core_type<tc>, window_params = [{transform_indices = @transform_0, window_bounds = array<i64: 16, 32>}, {pipeline_mode = #tpu.pipeline_mode<synchronous>, transform_indices = @transform_1, window_bounds = array<i64: 32, 32>}, {pipeline_mode = #tpu.pipeline_mode<synchronous>, transform_indices = @transform_2, window_bounds = array<i64: 1, 32>}, {pipeline_mode = #tpu.pipeline_mode<synchronous>, transform_indices = @transform_3, window_bounds = array<i64: 32, 32>}, {pipeline_mode = #tpu.pipeline_mode<synchronous>, transform_indices = @transform_4, window_bounds = array<i64: 1, 32>}, {pipeline_mode = #tpu.pipeline_mode<synchronous>, transform_indices = @transform_5, window_bounds = array<i64: 32, 32>}, {pipeline_mode = #tpu.pipeline_mode<synchronous>, transform_indices = @transform_6, window_bounds = array<i64: 1, 32>}, {transform_indices = @transform_7, window_bounds = array<i64: 16, 32>}, {transform_indices = @transform_8, window_bounds = array<i64: 16, 32>}, {transform_indices = @transform_9, window_bounds = array<i64: 16, 32>}]} {
    %c0 = arith.constant 0 : index
    %c0_0 = arith.constant 0 : index
    %0 = vector.load %arg1[%c0, %c0_0] : memref<16x32xf32, #tpu.memory_space<vmem>>, vector<16x32xf32>
    %c0_1 = arith.constant 0 : index
    %c0_2 = arith.constant 0 : index
    %1 = vector.load %arg2[%c0_1, %c0_2] : memref<32x32xf32, #tpu.memory_space<vmem>>, vector<32x32xf32>
    %cst = arith.constant dense<0.000000e+00> : vector<16x32xf32>
    %2 = tpu.matmul %0, %1, %cst {dimension_numbers = #tpu.dot_dimension_numbers<[1], [0], [0], [1], [0, 0, 1, 1], [], []>} : vector<16x32xf32>, vector<32x32xf32>, vector<16x32xf32> -> vector<16x32xf32>
    %c0_3 = arith.constant 0 : index
    %c0_4 = arith.constant 0 : index
    %3 = vector.load %arg3[%c0_3, %c0_4] : memref<1x32xf32, #tpu.memory_space<vmem>>, vector<1x32xf32>
    %4 = vector.broadcast %3 : vector<1x32xf32> to vector<16x32xf32>
    %5 = arith.addf %2, %4 : vector<16x32xf32>
    %c0_5 = arith.constant 0 : index
    %c0_6 = arith.constant 0 : index
    %6 = vector.load %arg8[%c0_5, %c0_6] : memref<16x32xf32, #tpu.memory_space<vmem>>, vector<16x32xf32>
    tpu.vector_store %arg8[%c0_5, %c0_6], %5 {strides = array<i32>} : memref<16x32xf32, #tpu.memory_space<vmem>>, vector<16x32xf32>,
    %c0_7 = arith.constant 0 : index
    %c0_8 = arith.constant 0 : index
    %7 = vector.load %arg4[%c0_7, %c0_8] : memref<32x32xf32, #tpu.memory_space<vmem>>, vector<32x32xf32>
    %cst_9 = arith.constant dense<0.000000e+00> : vector<16x32xf32>
    %8 = tpu.matmul %0, %7, %cst_9 {dimension_numbers = #tpu.dot_dimension_numbers<[1], [0], [0], [1], [0, 0, 1, 1], [], []>} : vector<16x32xf32>, vector<32x32xf32>, vector<16x32xf32> -> vector<16x32xf32>
    %c0_10 = arith.constant 0 : index
    %c0_11 = arith.constant 0 : index
    %9 = vector.load %arg5[%c0_10, %c0_11] : memref<1x32xf32, #tpu.memory_space<vmem>>, vector<1x32xf32>
    %10 = vector.broadcast %9 : vector<1x32xf32> to vector<16x32xf32>
    %11 = arith.addf %8, %10 : vector<16x32xf32>
    %c0_12 = arith.constant 0 : index
    %c0_13 = arith.constant 0 : index
    %12 = vector.load %arg9[%c0_12, %c0_13] : memref<16x32xf32, #tpu.memory_space<vmem>>, vector<16x32xf32>
    tpu.vector_store %arg9[%c0_12, %c0_13], %11 {strides = array<i32>} : memref<16x32xf32, #tpu.memory_space<vmem>>, vector<16x32xf32>,
    %c0_14 = arith.constant 0 : index
    %c0_15 = arith.constant 0 : index
    %13 = vector.load %arg6[%c0_14, %c0_15] : memref<32x32xf32, #tpu.memory_space<vmem>>, vector<32x32xf32>
    %cst_16 = arith.constant dense<0.000000e+00> : vector<16x32xf32>
    %14 = tpu.matmul %0, %13, %cst_16 {dimension_numbers = #tpu.dot_dimension_numbers<[1], [0], [0], [1], [0, 0, 1, 1], [], []>} : vector<16x32xf32>, vector<32x32xf32>, vector<16x32xf32> -> vector<16x32xf32>
    %c0_17 = arith.constant 0 : index
    %c0_18 = arith.constant 0 : index
    %15 = vector.load %arg7[%c0_17, %c0_18] : memref<1x32xf32, #tpu.memory_space<vmem>>, vector<1x32xf32>
    %16 = vector.broadcast %15 : vector<1x32xf32> to vector<16x32xf32>
    %17 = arith.addf %14, %16 : vector<16x32xf32>
    %c0_19 = arith.constant 0 : index
    %c0_20 = arith.constant 0 : index
    %18 = vector.load %arg10[%c0_19, %c0_20] : memref<16x32xf32, #tpu.memory_space<vmem>>, vector<16x32xf32>
    tpu.vector_store %arg10[%c0_19, %c0_20], %17 {strides = array<i32>} : memref<16x32xf32, #tpu.memory_space<vmem>>, vector<16x32xf32>,
    return
  }
  func.func @transform_0(%arg0: i32) -> (i32, i32) {
    %c0_i32 = arith.constant 0 : i32
    %c0_i32_0 = arith.constant 0 : i32
    return %arg0, %c0_i32 : i32, i32
  }
  func.func @transform_1(%arg0: i32) -> (i32, i32) {
    %c0_i32 = arith.constant 0 : i32
    %c0_i32_0 = arith.constant 0 : i32
    %c0_i32_1 = arith.constant 0 : i32
    return %c0_i32, %c0_i32_0 : i32, i32
  }
  func.func @transform_2(%arg0: i32) -> (i32, i32) {
    %c0_i32 = arith.constant 0 : i32
    %c0_i32_0 = arith.constant 0 : i32
    %c0_i32_1 = arith.constant 0 : i32
    return %c0_i32, %c0_i32_0 : i32, i32
  }
  func.func @transform_3(%arg0: i32) -> (i32, i32) {
    %c0_i32 = arith.constant 0 : i32
    %c0_i32_0 = arith.constant 0 : i32
    %c0_i32_1 = arith.constant 0 : i32
    return %c0_i32, %c0_i32_0 : i32, i32
  }
  func.func @transform_4(%arg0: i32) -> (i32, i32) {
    %c0_i32 = arith.constant 0 : i32
    %c0_i32_0 = arith.constant 0 : i32
    %c0_i32_1 = arith.constant 0 : i32
    return %c0_i32, %c0_i32_0 : i32, i32
  }
  func.func @transform_5(%arg0: i32) -> (i32, i32) {
    %c0_i32 = arith.constant 0 : i32
    %c0_i32_0 = arith.constant 0 : i32
    %c0_i32_1 = arith.constant 0 : i32
    return %c0_i32, %c0_i32_0 : i32, i32
  }
  func.func @transform_6(%arg0: i32) -> (i32, i32) {
    %c0_i32 = arith.constant 0 : i32
    %c0_i32_0 = arith.constant 0 : i32
    %c0_i32_1 = arith.constant 0 : i32
    return %c0_i32, %c0_i32_0 : i32, i32
  }
  func.func @transform_7(%arg0: i32) -> (i32, i32) {
    %c0_i32 = arith.constant 0 : i32
    %c0_i32_0 = arith.constant 0 : i32
    return %arg0, %c0_i32 : i32, i32
  }
  func.func @transform_8(%arg0: i32) -> (i32, i32) {
    %c0_i32 = arith.constant 0 : i32
    %c0_i32_0 = arith.constant 0 : i32
    return %arg0, %c0_i32 : i32, i32
  }
  func.func @transform_9(%arg0: i32) -> (i32, i32) {
    %c0_i32 = arith.constant 0 : i32
    %c0_i32_0 = arith.constant 0 : i32
    return %arg0, %c0_i32 : i32, i32
  }
}

</mosaic_0001>

<bundles_post_ra>
// kernel: tpu_custom_call.1
= control target key start
LH: loop header
LB: loop body
LE: loop exit
PB: predicated region body
PF: predicated region fallthrough
CT: control target
= control target key end

     0   :  { %15 = vsyncpa [#allocation3], 0  ;;  %s750_s0 = inlined_call_operand.hbm [shape: f32[16,32], index: 0, kind: input, shape index: {}]   ;;  %s751_s1 = inlined_call_operand.hbm [shape: f32[32,32], index: 1, kind: input, shape index: {}]   ;;  %s752_s2 = inlined_call_operand.vmem [shape: f32[1,32], index: 2, kind: input, shape index: {}]   ;;  %s753_s3 = inlined_call_operand.hbm [shape: f32[32,32], index: 3, kind: input, shape index: {}]   ;;  %s754_s4 = inlined_call_operand.vmem [shape: f32[1,32], index: 4, kind: input, shape index: {}]   ;;  %s755_s5 = inlined_call_operand.hbm [shape: f32[32,32], index: 5, kind: input, shape index: {}]   ;;  %s756_s6 = inlined_call_operand.vmem [shape: f32[1,32], index: 6, kind: input, shape index: {}]   ;;  %s757_s7 = inlined_call_operand.hbm [shape: f32[16,32], index: 7, kind: output, shape index: {0}]   ;;  %s758_s8 = inlined_call_operand.hbm [shape: f32[16,32], index: 8, kind: output, shape index: {1}]   ;;  %s759_s9 = inlined_call_operand.hbm [shape: f32[16,32], index: 9, kind: output, shape index: {2}]  }
   0x1   :  { %16 = vsyncpa [#allocation6], 0 }
   0x2   :  { %17 = vsyncpa [#allocation9], 0 }
   0x3   :  { %18 = vsyncpa [#allocation4], 0 }
   0x4   :  { %19 = vsyncpa [#allocation12], 0  ;;  %s628_s30 = smov [#allocation5]   ;;  %s629_s11 = smov [#allocation2]  }
   0x5   :  { %s37_s10 = sshll.u32 %s628_s30, 4  ;;  %s25_s12 = sshll.u32 %s629_s11, 4  ;;  %s38_s10 = int_to_ptr.vmem [resolvable:$true] %s37_s10  ;;  %s26_s12 = int_to_ptr.vmem [resolvable:$true] %s25_s12 }
   0x6   :  { %s486_s13 = scalar_lea.vmem %s38_s10, 512  ;;  %p491_p1 = scmp.lt.s32.totalorder %s38_s10, %s38_s10 }
   0x7   :  { %p487_p0 = scmp.ne.s32.totalorder %s38_s10, %s486_s13  ;;  %p492_p2 = scmp.lt.s32.totalorder %s486_s13, %s486_s13 }
   0x9   :  { %p493_p3 = por %p492_p2, %p491_p1 }
   0xb   :  { %p494_p4 = pnand %p493_p3, %p487_p0 }
   0xd   :  { %497 = shalt.err (!%p494_p4)
}
   0xe   :  { %s630_s14 = smov 128   ;;  %s631_s15 = smov 8  }
   0xf   :  { %43 = dma.hbm_to_vmem [thread:$0]  %s751_s1, 512, %s38_s10, [#allocation6], %s630_s14, %s630_s14, %s631_s15  }
  0x10   :  { %s506_s18 = scalar_lea.vmem %s26_s12, 256  ;;  %p511_p6 = scmp.lt.s32.totalorder %s26_s12, %s26_s12 }
  0x11   :  { %p507_p5 = scmp.ne.s32.totalorder %s26_s12, %s506_s18  ;;  %p512_p7 = scmp.lt.s32.totalorder %s506_s18, %s506_s18 }
  0x13   :  { %p513_p8 = por %p512_p7, %p511_p6 }
  0x15   :  { %p514_p9 = pnand %p513_p8, %p507_p5 }
  0x17   :  { %517 = shalt.err (!%p514_p9)
}
  0x18   :  { %31 = dma.hbm_to_vmem [thread:$0]  %s750_s0, 256, %s26_s12, [#allocation3], %s630_s14, %s630_s14, %s631_s15  }
  0x19   :  { %s632_s21 = smov [#allocation7]   ;;  %s633_s23 = smov [#allocation8]  }
  0x1a   :  { %s51_s22 = sshll.u32 %s632_s21, 4  ;;  %s65_s24 = sshll.u32 %s633_s23, 4  ;;  %s52_s22 = int_to_ptr.vmem [resolvable:$true] %s51_s22  ;;  %s66_s24 = int_to_ptr.vmem [resolvable:$true] %s65_s24 }
  0x1b   :  { %s526_s1 = scalar_lea.vmem %s52_s22, 512  ;;  %p531_p11 = scmp.lt.s32.totalorder %s52_s22, %s52_s22 }
  0x1c   :  { %p527_p10 = scmp.ne.s32.totalorder %s52_s22, %s526_s1  ;;  %p532_p12 = scmp.lt.s32.totalorder %s526_s1, %s526_s1 }
  0x1e   :  { %p533_p13 = por %p532_p12, %p531_p11 }
  0x20   :  { %p534_p0 = pnand %p533_p13, %p527_p10 }
  0x22   :  { %537 = shalt.err (!%p534_p0)
}
  0x23   :  { %57 = dma.hbm_to_vmem [thread:$0]  %s753_s3, 512, %s52_s22, [#allocation6], %s630_s14, %s630_s14, %s631_s15  }
  0x24   :  { %s546_s0 = scalar_lea.vmem %s66_s24, 512  ;;  %p551_p2 = scmp.lt.s32.totalorder %s66_s24, %s66_s24 }
  0x25   :  { %p547_p1 = scmp.ne.s32.totalorder %s66_s24, %s546_s0  ;;  %p552_p3 = scmp.lt.s32.totalorder %s546_s0, %s546_s0 }
  0x27   :  { %p553_p4 = por %p552_p3, %p551_p2 }
  0x29   :  { %p554_p5 = pnand %p553_p4, %p547_p1 }
  0x2b   :  { %557 = shalt.err (!%p554_p5)
}
  0x2c   :  { %71 = dma.hbm_to_vmem [thread:$0]  %s755_s5, 512, %s66_s24, [#allocation9], %s630_s14, %s630_s14, %s631_s15  }
  0x2d   :  { %618 = dma.done.wait [#allocation3], 256  }
  0x2e   :  { %619 = vsyncadd [#allocation3], 4294967040 }
  0x2f   :  { %620 = dma.done.wait [#allocation6], 1024  }
  0x30   :  { %621 = vsyncadd [#allocation6], 4294966272 }
  0x31   :  { %622 = dma.done.wait [#allocation9], 512  }
  0x32   :  { %623 = vsyncadd [#allocation9], 4294966784  ;;  %v91_v0 = vld [vmem:[#allocation5 + $0x18] sm:$0xff]  ;;  %v90_v1 = vld [vmem:[#allocation5 + $0x10] sm:$0xff]  ;;  %vm99_vm0 = vcmask 261120   ;;  %s634_s29 = smov [#allocation10]  }
  0x33   :  { %436 = vmatprep.subr.mxu0 %v91_v0  ;;  %v186_v2 = vld [vmem:[#allocation7 + $0x18] sm:$0xff]  ;;  %v86_v3 = vld [vmem:[#allocation2] sm:$0xff]  ;;  %v89_v4 = vld [vmem:[#allocation5 + $0x8] sm:$0xff]  ;;  %s364_s30 = sshll.u32 %s634_s29, 4  ;;  %s635_s12 = smov [#allocation11]   ;;  %s365_s30 = int_to_ptr.vmem [resolvable:$true] %s364_s30 }
  0x34   :  { %437 = vmatpush3.msra.mxu0 %v91_v0  ;;  %447 = vmatprep.subr.mxu1 %v186_v2  ;;  %v185_v5 = vld [vmem:[#allocation7 + $0x10] sm:$0xff]  ;;  %v88_v6 = vld [vmem:[#allocation5] sm:$0xff]  ;;  %v184_v7 = vld [vmem:[#allocation7 + $0x8] sm:$0xff]  ;;  %s376_s13 = sshll.u32 %s635_s12, 4  ;;  %s558_s17 = scalar_lea.vmem %s365_s30, 256  ;;  %s377_s13 = int_to_ptr.vmem [resolvable:$true] %s376_s13 }
  0x35   :  { %438 = vmatprep.subr.mxu0 %v90_v1  ;;  %448 = vmatpush3.msra.mxu1 %v186_v2  ;;  %v87_v8 = vld [vmem:[#allocation2 + $0x8] sm:$0xff]  ;;  %v183_v10 = vld [vmem:[#allocation7] sm:$0xff]  ;;  %v273_v11 = vld [vmem:[#allocation8 + $0x10] sm:$0xff]  ;;  %p559_p6 = scmp.ne.s32.totalorder %s365_s30, %s558_s17  ;;  %p563_p7 = scmp.lt.s32.totalorder %s365_s30, %s365_s30 }
  0x36   :  { %439 = vmatpush3.msra.mxu0 %v90_v1  ;;  %444 = vmatprep.mubr.msk.f32.mxu0 %vm99_vm0, %v86_v3  ;;  %v274_v9 = vld [vmem:[#allocation8 + $0x18] sm:$0xff]  ;;  %v272_v12 = vld [vmem:[#allocation8 + $0x8] sm:$0xff]  ;;  %v271_v13 = vld [vmem:[#allocation8] sm:$0xff]  ;;  %p564_p8 = scmp.lt.s32.totalorder %s558_s17, %s558_s17 }
  0x37   :  { %440 = vmatprep.subr.mxu0 %v89_v4  ;;  %449 = vmatprep.subr.mxu1 %v185_v5  ;;  %v409_v14 = vld [vmem:[%s752_s2] ss:$0 sm:$0xff] }
  0x38   :  { %441 = vmatpush3.msra.mxu0 %v89_v4  ;;  %450 = vmatpush3.msra.mxu1 %v185_v5  ;;  %v412_v18 = vld [vmem:[%s754_s4] ss:$0 sm:$0xff]  ;;  %p565_p9 = por %p564_p8, %p563_p7 }
  0x39   :  { %442 = vmatprep.subr.mxu0 %v88_v6  ;;  %451 = vmatprep.subr.mxu1 %v184_v7  ;;  %v415_v22 = vld [vmem:[%s756_s6] ss:$0 sm:$0xff] }
  0x3a   :  { %443 = vmatpush3.msra.mxu0 %v88_v6  ;;  %452 = vmatpush3.msra.mxu1 %v184_v7  ;;  %p566_p10 = pnand %p565_p9, %p559_p6 }
  0x3b   :  { %445 = vmatmul.mubr.msk.f32.vlgmr.msra.gmra.mxu0 %vm99_vm0, %v87_v8  ;;  %458 = vmatprep.subr.mxu0 %v274_v9 }
  0x3c   :  { %459 = vmatpush3.msra.mxu0 %v274_v9  ;;  %453 = vmatprep.subr.mxu1 %v183_v10 }
  0x3d   :  { %460 = vmatprep.subr.mxu0 %v273_v11  ;;  %454 = vmatpush3.msra.mxu1 %v183_v10 }
  0x3e   :  { %461 = vmatpush3.msra.mxu0 %v273_v11  ;;  %455 = vmatprep.mubr.msk.f32.mxu1 %vm99_vm0, %v86_v3 }
  0x3f   :  { %462 = vmatprep.subr.mxu0 %v272_v12  ;;  %456 = vmatmul.mubr.msk.f32.vlgmr.msra.gmra.mxu1 %vm99_vm0, %v87_v8 }
  0x40   :  { %463 = vmatpush3.msra.mxu0 %v272_v12  ;;  %466 = vmatprep.mubr.msk.f32.mxu0 %vm99_vm0, %v86_v3 }
  0x41   :  { %464 = vmatprep.subr.mxu0 %v271_v13 }
  0x42   :  { %465 = vmatpush3.msra.mxu0 %v271_v13 }
  0x43   :  { %467 = vmatmul.mubr.msk.f32.vlgmr.msra.gmra.mxu0 %vm99_vm0, %v87_v8 }
  0xfb   :  { %v446_v15 = vpop.f32.mrf.mxu0 }
  0xfc   :  { %v178_v16 = vadd.f32 %v446_v15, %v409_v14 }
  0xfd   :  { %v172_v17 = vpop.f32.mrf.mxu0 }
  0xfe   :  { %182 = vst.msk [vmem:[#allocation10 + $0x8] sm:$0xff] %vm99_vm0, %v178_v16  ;;  %v173_v19 = vadd.f32 %v409_v14, %v172_v17 }
  0xff   :  { %v457_v20 = vpop.f32.mrf.mxu1 }
 0x100   :  { %181 = vst.msk [vmem:[#allocation10] sm:$0xff] %vm99_vm0, %v173_v19  ;;  %v266_v21 = vadd.f32 %v457_v20, %v412_v18 }
 0x101   :  { %v260_v23 = vpop.f32.mrf.mxu1 }
 0x102   :  { %569 = shalt.err (!%p566_p10)
}
 0x103   :  { %370 = dma.vmem_to_hbm [thread:$0]  %s365_s30, 256, %s757_s7, [#allocation4], %s630_s14, %s630_s14, %s631_s15   ;;  %270 = vst.msk [vmem:[#allocation11 + $0x8] sm:$0xff] %vm99_vm0, %v266_v21  ;;  %v261_v24 = vadd.f32 %v412_v18, %v260_v23  ;;  %v468_v25 = vpop.f32.mrf.mxu0 }
 0x104   :  { %s636_s6 = smov [#allocation13]   ;;  %v354_v26 = vadd.f32 %v468_v25, %v415_v22  ;;  %s578_s20 = scalar_lea.vmem %s377_s13, 256 }
 0x105   :  { %s388_s19 = sshll.u32 %s636_s6, 4  ;;  %269 = vst.msk [vmem:[#allocation11] sm:$0xff] %vm99_vm0, %v261_v24  ;;  %v348_v27 = vpop.f32.mrf.mxu0  ;;  %p579_p11 = scmp.ne.s32.totalorder %s377_s13, %s578_s20  ;;  %s389_s19 = int_to_ptr.vmem [resolvable:$true] %s388_s19 }
 0x106   :  { %p583_p12 = scmp.lt.s32.totalorder %s377_s13, %s377_s13  ;;  %p584_p13 = scmp.lt.s32.totalorder %s578_s20, %s578_s20 }
 0x108   :  { %p585_p0 = por %p584_p13, %p583_p12 }
 0x10a   :  { %p586_p1 = pnand %p585_p0, %p579_p11 }
 0x10c   :  { %589 = shalt.err (!%p586_p1)
}
 0x10d   :  { %382 = dma.vmem_to_hbm [thread:$0]  %s377_s13, 256, %s758_s8, [#allocation12], %s630_s14, %s630_s14, %s631_s15   ;;  %358 = vst.msk [vmem:[#allocation13 + $0x8] sm:$0xff] %vm99_vm0, %v354_v26  ;;  %v349_v28 = vadd.f32 %v415_v22, %v348_v27 }
 0x10e   :  { %s598_s22 = scalar_lea.vmem %s389_s19, 256  ;;  %p603_p3 = scmp.lt.s32.totalorder %s389_s19, %s389_s19 }
 0x10f   :  { %357 = vst.msk [vmem:[#allocation13] sm:$0xff] %vm99_vm0, %v349_v28  ;;  %p599_p2 = scmp.ne.s32.totalorder %s389_s19, %s598_s22  ;;  %p604_p4 = scmp.lt.s32.totalorder %s598_s22, %s598_s22 }
 0x111   :  { %p605_p5 = por %p604_p4, %p603_p3 }
 0x113   :  { %p606_p6 = pnand %p605_p5, %p599_p2 }
 0x115   :  { %609 = shalt.err (!%p606_p6)
}
 0x116   :  { %394 = dma.vmem_to_hbm [thread:$0]  %s389_s19, 256, %s759_s9, [#allocation12], %s630_s14, %s630_s14, %s631_s15  }
 0x117   :  { %624 = dma.done.wait [#allocation4], 256  }
 0x118   :  { %625 = vsyncadd [#allocation4], 4294967040 }
 0x119   :  { %626 = dma.done.wait [#allocation12], 512  }
 0x11a   :  { %627 = vsyncadd [#allocation12], 4294966784 }
 0x11b   :  { %404 = vsyncpa [#allocation3], 1 }
 0x11c   :  { %405 = vsyncpa [#allocation6], 1 }
 0x11d   :  { %406 = vsyncpa [#allocation9], 1 }
 0x11e   :  { %407 = vsyncpa [#allocation4], 1 }
 0x11f   :  { %408 = vsyncpa [#allocation12], 1 }

</bundles_post_ra>
